<compile_context>
chip_gen: v7x
topology: tpu7x:2x2x1
jax: 0.10.0
libtpu: 0.0.40
codegen_flags: <defaults>
</compile_context>

<pallas_src>
import math
from functools import partial

import numpy as np
import jax
import jax.numpy as jnp
from jax import lax
from jax.experimental import pallas as pl
from jax.experimental.pallas import tpu as pltpu

# ----------------------------------------------------------------------------
# Module hyper-parameters (mirror MultiHeadedAttentionBlur.__init__)
# ----------------------------------------------------------------------------
EMBED_DIM = 32
NUM_HEADS = 2
HEAD_DIM = EMBED_DIM // NUM_HEADS
SCALE = 1.0
KERNEL_SIZE = 3        # module default is 1 (identity blur); 3 exercises the blur
SIGMA = 1.0

BATCH = 2
SEQ = 16               # must be a perfect square: num_patches ** 2
NUM_PATCHES = int(math.sqrt(SEQ))


# ----------------------------------------------------------------------------
# Precompute the gaussian-blur linear operator (matches
# torchvision.transforms.functional.gaussian_blur on NCHW with reflect pad).
# ----------------------------------------------------------------------------
def _gaussian_kernel1d(ksize, sigma):
    half = (ksize - 1) * 0.5
    x = np.linspace(-half, half, ksize)
    pdf = np.exp(-0.5 * (x / sigma) ** 2)
    return pdf / pdf.sum()


def _reflect(i, n):
    # torch "reflect" padding (no edge repeat)
    if i < 0:
        return -i
    if i >= n:
        return 2 * n - 2 - i
    return i


def build_blur_matrix(p, ksize, sigma):
    """(P*P, P*P) matrix B such that blurred_row = B @ row (row = key grid)."""
    k1 = _gaussian_kernel1d(ksize, sigma)
    r = ksize // 2
    mat = np.zeros((p * p, p * p), dtype=np.float64)
    for i in range(p):
        for j in range(p):
            for di in range(-r, r + 1):
                for dj in range(-r, r + 1):
                    si = _reflect(i + di, p)
                    sj = _reflect(j + dj, p)
                    mat[i * p + j, si * p + sj] += k1[di + r] * k1[dj + r]
    return mat.astype(np.float32)


# ----------------------------------------------------------------------------
# Fused Pallas kernel: projection + blur-on-activations + QK^T + batched softmax
# all resident in VMEM for one grid step.
# ----------------------------------------------------------------------------
def _make_kernel(batch_per_step):
    def kernel(x_ref, wk_ref, wq_ref, blur_ref, o_ref, logit_ref):
        """x: (bpg, S, E) f32; wk/wq: (E, H*D) bf16; blur: (S, S) bf16 with
        scale folded in; o: (bpg*H, S, S) f32; logit_ref: f32 VMEM scratch."""
        blur = blur_ref[...]                                  # bf16, hoisted
        wk = wk_ref[...]                                      # (E, H*D) bf16
        wq = wq_ref[...]                                      # (E, H*D) bf16
        for b in range(batch_per_step):                       # static, tiny, unrolled
            x_b = x_ref[b].astype(jnp.bfloat16)               # (S, E) -- single cast
            # blur (scale folded in) applied to activations once per batch:
            #   scale*(Q K^T) B^T == Q ((scale*B) X Wk)^T == Q (((scale*B) X) Wk)^T
            xb_blur = jnp.dot(blur, x_b,
                              preferred_element_type=jnp.float32)          # (S, E)
            # one wide projection per batch for ALL heads (better MXU column fill)
            q_all = jnp.dot(x_b, wq,
                            preferred_element_type=jnp.float32)            # (S, H*D)
            kb_all = jnp.dot(xb_blur.astype(jnp.bfloat16), wk,
                             preferred_element_type=jnp.float32)           # (S, H*D)
            for h in range(NUM_HEADS):
                lo = h * HEAD_DIM
                q = q_all[:, lo:lo + HEAD_DIM]                             # (S, D) f32
                kb = kb_all[:, lo:lo + HEAD_DIM]                           # (S, D) f32
                # blurred logits = Q @ Kb^T; contraction on last dims (no .T),
                # kept in f32 (not MXU-bound -> no extra bf16 re-casts needed)
                logit_ref[b * NUM_HEADS + h] = lax.dot_general(
                    q, kb,
                    dimension_numbers=(((1,), (1,)), ((), ())),
                    preferred_element_type=jnp.float32)                    # (S, S)
        # ONE batched softmax over all (bpg*H) heads + ONE output store
        logits = logit_ref[...]                                            # (bpg*H,S,S)
        m = jnp.max(logits, axis=-1, keepdims=True)
        e = jnp.exp(logits - m)
        inv = pl.reciprocal(jnp.sum(e, axis=-1, keepdims=True), approx=True)
        o_ref[...] = (e * inv).astype(o_ref.dtype)
    return kernel


# ----------------------------------------------------------------------------
# One-time parameter prep (kept OFF the per-forward path)
# ----------------------------------------------------------------------------
def prepare_params(input_weights, blur_matrix, scale=SCALE):
    """Split out K/Q weights, concat heads into (E, H*D) slabs, fold scale into
    the blur operator, and cast parameters to bf16 once."""
    # F.linear chunk order is (values, keys, queries); forward() only needs K, Q.
    w = input_weights.reshape(3, NUM_HEADS, HEAD_DIM, EMBED_DIM)    # (3, H, D, E)
    # (E, H*D): column h*D+d holds head-h weight row d  ->  x @ wk == per-head K concat
    wk_all = jnp.transpose(w[1], (2, 0, 1)).reshape(EMBED_DIM, NUM_HEADS * HEAD_DIM)
    wq_all = jnp.transpose(w[2], (2, 0, 1)).reshape(EMBED_DIM, NUM_HEADS * HEAD_DIM)
    blur_scaled = scale * blur_matrix                               # fold scale in
    return (wk_all.astype(jnp.bfloat16),
            wq_all.astype(jnp.bfloat16),
            blur_scaled.astype(jnp.bfloat16))


def _batch_per_grid_step(batch):
    """v7x has 2 TensorCores/chip -> split the batch over a parallel grid axis.
    On 1-TC chips (v5e/v6e) extra grid steps are pure overhead -> single step."""
    try:
        kind = jax.devices()[0].device_kind.lower()
    except Exception:
        kind = ""
    if "v7" in kind and batch >= 2:
        return 1
    return batch


# ----------------------------------------------------------------------------
# Forward wrapper (jit-friendly; batch_per_step is static)
# ----------------------------------------------------------------------------
def multi_headed_attention_blur_forward(x, wk_all, wq_all, blur_scaled,
                                        *, batch_per_step):
    """Same-tensor path of MultiHeadedAttentionBlur.forward -> attention weights."""
    b, s, e = x.shape
    hd = NUM_HEADS * HEAD_DIM
    assert b % batch_per_step == 0
    grid = (b // batch_per_step,)
    return pl.pallas_call(
        _make_kernel(batch_per_step),
        out_shape=jax.ShapeDtypeStruct((b * NUM_HEADS, s, s), jnp.float32),
        grid=grid,
        in_specs=[
            pl.BlockSpec((batch_per_step, s, e), lambda i: (i, 0, 0)),
            pl.BlockSpec((e, hd), lambda i: (0, 0)),
            pl.BlockSpec((e, hd), lambda i: (0, 0)),
            pl.BlockSpec((s, s), lambda i: (0, 0)),
        ],
        out_specs=pl.BlockSpec((batch_per_step * NUM_HEADS, s, s),
                               lambda i: (i, 0, 0)),
        scratch_shapes=[pltpu.VMEM((batch_per_step * NUM_HEADS, s, s), jnp.float32)],
        compiler_params=pltpu.CompilerParams(dimension_semantics=("parallel",)),
    )(x, wk_all, wq_all, blur_scaled)


def xavier_uniform(key, shape, gain=1.0):
    fan_out, fan_in = shape                   # PyTorch convention for 2-D weights
    bound = gain * math.sqrt(6.0 / (fan_in + fan_out))
    return jax.random.uniform(key, shape, jnp.float32, -bound, bound)


# ----------------------------------------------------------------------------
# Main
# ----------------------------------------------------------------------------
if __name__ == "__main__":
    key = jax.random.PRNGKey(0)
    k_w, k_wo, k_x = jax.random.split(key, 3)

    input_weights = xavier_uniform(k_w, (3 * EMBED_DIM, EMBED_DIM))
    # output_projection is a module parameter but unused by this forward()
    _output_projection_weight = xavier_uniform(k_wo, (EMBED_DIM, EMBED_DIM))

    x = jax.random.normal(k_x, (BATCH, SEQ, EMBED_DIM), jnp.float32)
    blur_mat = jnp.asarray(build_blur_matrix(NUM_PATCHES, KERNEL_SIZE, SIGMA))

    # one-time prep (off the forward path)
    wk_all, wq_all, blur_scaled = prepare_params(input_weights, blur_mat, SCALE)
    bpg = _batch_per_grid_step(BATCH)
    forward = jax.jit(partial(multi_headed_attention_blur_forward,
                              batch_per_step=bpg))

    attn = forward(x, wk_all, wq_all, blur_scaled)
    attn = jax.block_until_ready(attn)

    # ----- pure-JAX f32 reference (original module semantics) -----
    proj_ref = (x.reshape(-1, EMBED_DIM) @ input_weights.T).reshape(BATCH, SEQ, 3 * EMBED_DIM)
    v_r, k_r, q_r = jnp.split(proj_ref, 3, axis=-1)     # F.linear chunk order: V, K, Q

    def _to_heads(t):
        return (t.reshape(BATCH, SEQ, NUM_HEADS, HEAD_DIM)
                 .transpose(0, 2, 1, 3)
                 .reshape(BATCH * NUM_HEADS, SEQ, HEAD_DIM))

    q_r, k_r = _to_heads(q_r), _to_heads(k_r)
    logits_ref = SCALE * jnp.einsum("bqd,bkd->bqk", q_r, k_r)
    blurred_ref = jnp.einsum("bqk,sk->bqs", logits_ref, blur_mat)
    ref = jax.nn.softmax(blurred_ref, axis=-1)

    assert attn.shape == (BATCH * NUM_HEADS, SEQ, SEQ)
    # bf16 parameter/activation casts + approx reciprocal vs f32 reference
    np.testing.assert_allclose(np.asarray(attn), np.asarray(ref), rtol=5e-2, atol=5e-3)
    print("KERNEL_OK")
</pallas_src>

<mosaic_0001>
module attributes {stable_mosaic.version = 11 : i64} {
  func.func @kernel(%arg0: i32, %arg1: memref<2x16x32xf32, #tpu.memory_space<vmem>>, %arg2: memref<32x32xbf16, #tpu.memory_space<vmem>>, %arg3: memref<32x32xbf16, #tpu.memory_space<vmem>>, %arg4: memref<16x16xbf16, #tpu.memory_space<vmem>>, %arg5: memref<4x16x16xf32, #tpu.memory_space<vmem>>, %arg6: memref<4x16x16xf32, #tpu.memory_space<vmem>>) attributes {dimension_semantics = [#tpu.dimension_semantics<parallel>], iteration_bounds = array<i64: 1>, scalar_prefetch = 0 : i64, scratch_operands = 1 : i64, tpu.core_type = #tpu.core_type<tc>, window_params = [{transform_indices = @transform_0, window_bounds = array<i64: 2, 16, 32>}, {pipeline_mode = #tpu.pipeline_mode<synchronous>, transform_indices = @transform_1, window_bounds = array<i64: 32, 32>}, {pipeline_mode = #tpu.pipeline_mode<synchronous>, transform_indices = @transform_2, window_bounds = array<i64: 32, 32>}, {pipeline_mode = #tpu.pipeline_mode<synchronous>, transform_indices = @transform_3, window_bounds = array<i64: 16, 16>}, {transform_indices = @transform_4, window_bounds = array<i64: 4, 16, 16>}]} {
    %c0 = arith.constant 0 : index
    %c0_0 = arith.constant 0 : index
    %0 = vector.load %arg4[%c0, %c0_0] : memref<16x16xbf16, #tpu.memory_space<vmem>>, vector<16x16xbf16>
    %c0_1 = arith.constant 0 : index
    %c0_2 = arith.constant 0 : index
    %1 = vector.load %arg2[%c0_1, %c0_2] : memref<32x32xbf16, #tpu.memory_space<vmem>>, vector<32x32xbf16>
    %c0_3 = arith.constant 0 : index
    %c0_4 = arith.constant 0 : index
    %2 = vector.load %arg3[%c0_3, %c0_4] : memref<32x32xbf16, #tpu.memory_space<vmem>>, vector<32x32xbf16>
    %c0_5 = arith.constant 0 : index
    %c0_6 = arith.constant 0 : index
    %c0_7 = arith.constant 0 : index
    %3 = vector.load %arg1[%c0_5, %c0_6, %c0_7] : memref<2x16x32xf32, #tpu.memory_space<vmem>>, vector<1x16x32xf32>
    %4 = vector.shape_cast %3 : vector<1x16x32xf32> to vector<16x32xf32>
    %5 = arith.truncf %4 : vector<16x32xf32> to vector<16x32xbf16>
    %cst = arith.constant dense<0.000000e+00> : vector<16x32xf32>
    %6 = tpu.matmul %0, %5, %cst {dimension_numbers = #tpu.dot_dimension_numbers<[1], [0], [0], [1], [0, 0, 1, 1], [], []>} : vector<16x16xbf16>, vector<16x32xbf16>, vector<16x32xf32> -> vector<16x32xf32>
    %cst_8 = arith.constant dense<0.000000e+00> : vector<16x32xf32>
    %7 = tpu.matmul %5, %2, %cst_8 {dimension_numbers = #tpu.dot_dimension_numbers<[1], [0], [0], [1], [0, 0, 1, 1], [], []>} : vector<16x32xbf16>, vector<32x32xbf16>, vector<16x32xf32> -> vector<16x32xf32>
    %8 = arith.truncf %6 : vector<16x32xf32> to vector<16x32xbf16>
    %cst_9 = arith.constant dense<0.000000e+00> : vector<16x32xf32>
    %9 = tpu.matmul %8, %1, %cst_9 {dimension_numbers = #tpu.dot_dimension_numbers<[1], [0], [0], [1], [0, 0, 1, 1], [], []>} : vector<16x32xbf16>, vector<32x32xbf16>, vector<16x32xf32> -> vector<16x32xf32>
    %10 = vector.extract_strided_slice %7 {offsets = [0, 0], sizes = [16, 16], strides = [1, 1]} : vector<16x32xf32> to vector<16x16xf32>
    %11 = vector.extract_strided_slice %9 {offsets = [0, 0], sizes = [16, 16], strides = [1, 1]} : vector<16x32xf32> to vector<16x16xf32>
    %cst_10 = arith.constant dense<0.000000e+00> : vector<16x16xf32>
    %12 = tpu.matmul %10, %11, %cst_10 {dimension_numbers = #tpu.dot_dimension_numbers<[1], [1], [0], [0], [0, 0, 1, 0], [], []>} : vector<16x16xf32>, vector<16x16xf32>, vector<16x16xf32> -> vector<16x16xf32>
    %c0_11 = arith.constant 0 : index
    %c0_12 = arith.constant 0 : index
    %c0_13 = arith.constant 0 : index
    %13 = vector.load %arg6[%c0_11, %c0_12, %c0_13] : memref<4x16x16xf32, #tpu.memory_space<vmem>>, vector<1x16x16xf32>
    %14 = vector.shape_cast %13 : vector<1x16x16xf32> to vector<16x16xf32>
    %15 = vector.shape_cast %12 : vector<16x16xf32> to vector<1x16x16xf32>
    tpu.vector_store %arg6[%c0_11, %c0_12, %c0_13], %15 {strides = array<i32>} : memref<4x16x16xf32, #tpu.memory_space<vmem>>, vector<1x16x16xf32>,
    %16 = vector.extract_strided_slice %7 {offsets = [0, 16], sizes = [16, 16], strides = [1, 1]} : vector<16x32xf32> to vector<16x16xf32>
    %17 = vector.extract_strided_slice %9 {offsets = [0, 16], sizes = [16, 16], strides = [1, 1]} : vector<16x32xf32> to vector<16x16xf32>
    %cst_14 = arith.constant dense<0.000000e+00> : vector<16x16xf32>
    %18 = tpu.matmul %16, %17, %cst_14 {dimension_numbers = #tpu.dot_dimension_numbers<[1], [1], [0], [0], [0, 0, 1, 0], [], []>} : vector<16x16xf32>, vector<16x16xf32>, vector<16x16xf32> -> vector<16x16xf32>
    %c1 = arith.constant 1 : index
    %c0_15 = arith.constant 0 : index
    %c0_16 = arith.constant 0 : index
    %19 = vector.load %arg6[%c1, %c0_15, %c0_16] : memref<4x16x16xf32, #tpu.memory_space<vmem>>, vector<1x16x16xf32>
    %20 = vector.shape_cast %19 : vector<1x16x16xf32> to vector<16x16xf32>
    %21 = vector.shape_cast %18 : vector<16x16xf32> to vector<1x16x16xf32>
    tpu.vector_store %arg6[%c1, %c0_15, %c0_16], %21 {strides = array<i32>} : memref<4x16x16xf32, #tpu.memory_space<vmem>>, vector<1x16x16xf32>,
    %c1_17 = arith.constant 1 : index
    %c0_18 = arith.constant 0 : index
    %c0_19 = arith.constant 0 : index
    %22 = vector.load %arg1[%c1_17, %c0_18, %c0_19] : memref<2x16x32xf32, #tpu.memory_space<vmem>>, vector<1x16x32xf32>
    %23 = vector.shape_cast %22 : vector<1x16x32xf32> to vector<16x32xf32>
    %24 = arith.truncf %23 : vector<16x32xf32> to vector<16x32xbf16>
    %cst_20 = arith.constant dense<0.000000e+00> : vector<16x32xf32>
    %25 = tpu.matmul %0, %24, %cst_20 {dimension_numbers = #tpu.dot_dimension_numbers<[1], [0], [0], [1], [0, 0, 1, 1], [], []>} : vector<16x16xbf16>, vector<16x32xbf16>, vector<16x32xf32> -> vector<16x32xf32>
    %cst_21 = arith.constant dense<0.000000e+00> : vector<16x32xf32>
    %26 = tpu.matmul %24, %2, %cst_21 {dimension_numbers = #tpu.dot_dimension_numbers<[1], [0], [0], [1], [0, 0, 1, 1], [], []>} : vector<16x32xbf16>, vector<32x32xbf16>, vector<16x32xf32> -> vector<16x32xf32>
    %27 = arith.truncf %25 : vector<16x32xf32> to vector<16x32xbf16>
    %cst_22 = arith.constant dense<0.000000e+00> : vector<16x32xf32>
    %28 = tpu.matmul %27, %1, %cst_22 {dimension_numbers = #tpu.dot_dimension_numbers<[1], [0], [0], [1], [0, 0, 1, 1], [], []>} : vector<16x32xbf16>, vector<32x32xbf16>, vector<16x32xf32> -> vector<16x32xf32>
    %29 = vector.extract_strided_slice %26 {offsets = [0, 0], sizes = [16, 16], strides = [1, 1]} : vector<16x32xf32> to vector<16x16xf32>
    %30 = vector.extract_strided_slice %28 {offsets = [0, 0], sizes = [16, 16], strides = [1, 1]} : vector<16x32xf32> to vector<16x16xf32>
    %cst_23 = arith.constant dense<0.000000e+00> : vector<16x16xf32>
    %31 = tpu.matmul %29, %30, %cst_23 {dimension_numbers = #tpu.dot_dimension_numbers<[1], [1], [0], [0], [0, 0, 1, 0], [], []>} : vector<16x16xf32>, vector<16x16xf32>, vector<16x16xf32> -> vector<16x16xf32>
    %c2 = arith.constant 2 : index
    %c0_24 = arith.constant 0 : index
    %c0_25 = arith.constant 0 : index
    %32 = vector.load %arg6[%c2, %c0_24, %c0_25] : memref<4x16x16xf32, #tpu.memory_space<vmem>>, vector<1x16x16xf32>
    %33 = vector.shape_cast %32 : vector<1x16x16xf32> to vector<16x16xf32>
    %34 = vector.shape_cast %31 : vector<16x16xf32> to vector<1x16x16xf32>
    tpu.vector_store %arg6[%c2, %c0_24, %c0_25], %34 {strides = array<i32>} : memref<4x16x16xf32, #tpu.memory_space<vmem>>, vector<1x16x16xf32>,
    %35 = vector.extract_strided_slice %26 {offsets = [0, 16], sizes = [16, 16], strides = [1, 1]} : vector<16x32xf32> to vector<16x16xf32>
    %36 = vector.extract_strided_slice %28 {offsets = [0, 16], sizes = [16, 16], strides = [1, 1]} : vector<16x32xf32> to vector<16x16xf32>
    %cst_26 = arith.constant dense<0.000000e+00> : vector<16x16xf32>
    %37 = tpu.matmul %35, %36, %cst_26 {dimension_numbers = #tpu.dot_dimension_numbers<[1], [1], [0], [0], [0, 0, 1, 0], [], []>} : vector<16x16xf32>, vector<16x16xf32>, vector<16x16xf32> -> vector<16x16xf32>
    %c3 = arith.constant 3 : index
    %c0_27 = arith.constant 0 : index
    %c0_28 = arith.constant 0 : index
    %38 = vector.load %arg6[%c3, %c0_27, %c0_28] : memref<4x16x16xf32, #tpu.memory_space<vmem>>, vector<1x16x16xf32>
    %39 = vector.shape_cast %38 : vector<1x16x16xf32> to vector<16x16xf32>
    %40 = vector.shape_cast %37 : vector<16x16xf32> to vector<1x16x16xf32>
    tpu.vector_store %arg6[%c3, %c0_27, %c0_28], %40 {strides = array<i32>} : memref<4x16x16xf32, #tpu.memory_space<vmem>>, vector<1x16x16xf32>,
    %c0_29 = arith.constant 0 : index
    %c0_30 = arith.constant 0 : index
    %c0_31 = arith.constant 0 : index
    %41 = vector.load %arg6[%c0_29, %c0_30, %c0_31] : memref<4x16x16xf32, #tpu.memory_space<vmem>>, vector<4x16x16xf32>
    %cst_32 = arith.constant dense<0xFF800000> : vector<4x16xf32>
    %42 = vector.multi_reduction <maximumf>, %41, %cst_32 [2] : vector<4x16x16xf32> to vector<4x16xf32>
    %43 = vector.shape_cast %42 : vector<4x16xf32> to vector<4x16x1xf32>
    %44 = vector.broadcast %43 : vector<4x16x1xf32> to vector<4x16x16xf32>
    %45 = arith.subf %41, %44 : vector<4x16x16xf32>
    %46 = math.exp %45 : vector<4x16x16xf32>
    %cst_33 = arith.constant dense<0.000000e+00> : vector<4x16xf32>
    %47 = vector.multi_reduction <add>, %46, %cst_33 [2] : vector<4x16x16xf32> to vector<4x16xf32>
    %48 = vector.shape_cast %47 : vector<4x16xf32> to vector<4x16x1xf32>
    %49 = tpu.reciprocal %48 {approx = true} : vector<4x16x1xf32> -> vector<4x16x1xf32>
    %50 = vector.broadcast %49 : vector<4x16x1xf32> to vector<4x16x16xf32>
    %51 = arith.mulf %46, %50 : vector<4x16x16xf32>
    %c0_34 = arith.constant 0 : index
    %c0_35 = arith.constant 0 : index
    %c0_36 = arith.constant 0 : index
    %52 = vector.load %arg5[%c0_34, %c0_35, %c0_36] : memref<4x16x16xf32, #tpu.memory_space<vmem>>, vector<4x16x16xf32>
    tpu.vector_store %arg5[%c0_34, %c0_35, %c0_36], %51 {strides = array<i32>} : memref<4x16x16xf32, #tpu.memory_space<vmem>>, vector<4x16x16xf32>,
    return
  }
  func.func @transform_0(%arg0: i32) -> (i32, i32, i32) {
    %c0_i32 = arith.constant 0 : i32
    %c0_i32_0 = arith.constant 0 : i32
    %c0_i32_1 = arith.constant 0 : i32
    return %arg0, %c0_i32, %c0_i32_0 : i32, i32, i32
  }
  func.func @transform_1(%arg0: i32) -> (i32, i32) {
    %c0_i32 = arith.constant 0 : i32
    %c0_i32_0 = arith.constant 0 : i32
    %c0_i32_1 = arith.constant 0 : i32
    return %c0_i32, %c0_i32_0 : i32, i32
  }
  func.func @transform_2(%arg0: i32) -> (i32, i32) {
    %c0_i32 = arith.constant 0 : i32
    %c0_i32_0 = arith.constant 0 : i32
    %c0_i32_1 = arith.constant 0 : i32
    return %c0_i32, %c0_i32_0 : i32, i32
  }
  func.func @transform_3(%arg0: i32) -> (i32, i32) {
    %c0_i32 = arith.constant 0 : i32
    %c0_i32_0 = arith.constant 0 : i32
    %c0_i32_1 = arith.constant 0 : i32
    return %c0_i32, %c0_i32_0 : i32, i32
  }
  func.func @transform_4(%arg0: i32) -> (i32, i32, i32) {
    %c0_i32 = arith.constant 0 : i32
    %c0_i32_0 = arith.constant 0 : i32
    %c0_i32_1 = arith.constant 0 : i32
    return %arg0, %c0_i32, %c0_i32_0 : i32, i32, i32
  }
}

</mosaic_0001>

<bundles_post_ra>
// kernel: multi_headed_attention_blur_forward.1
= control target key start
LH: loop header
LB: loop body
LE: loop exit
PB: predicated region body
PF: predicated region fallthrough
CT: control target
= control target key end

     0   :  { %9 = vsyncpa [#allocation4], 0  ;;  %s1362_s0 = inlined_call_operand.hbm [shape: f32[2,16,32], index: 0, kind: input, shape index: {}]   ;;  %s1363_s1 = inlined_call_operand.hbm [shape: bf16[32,32], index: 1, kind: input, shape index: {}]   ;;  %s1364_s2 = inlined_call_operand.hbm [shape: bf16[32,32], index: 2, kind: input, shape index: {}]   ;;  %s1365_s3 = inlined_call_operand.vmem [shape: bf16[16,16], index: 3, kind: input, shape index: {}]   ;;  %s1366_s4 = inlined_call_operand.hbm [shape: f32[4,16,16], index: 4, kind: output, shape index: {}]  }
   0x1   :  { %10 = vsyncpa [#allocation7], 0 }
   0x2   :  { %11 = vsyncpa [#allocation5], 0  ;;  %s1167_s15 = smov [#allocation6]   ;;  %s1073_s19 = scalar_lea.hbm %s1363_s1, 256 }
   0x3   :  { %s29_s16 = sshll.u32 %s1167_s15, 4  ;;  %p1074_p0 = scmp.ne.s32.totalorder %s1363_s1, %s1073_s19  ;;  %s30_s16 = int_to_ptr.vmem [resolvable:$true] %s29_s16 }
   0x4   :  { %p1077_p1 = scmp.lt.u32.totalorder %s1073_s19, %s1363_s1 }
   0x6   :  { %p1079_p2 = pnand %p1077_p1, %p1074_p0 }
   0x8   :  { %1082 = shalt.err (!%p1079_p2)
}
   0x9   :  { %s1083_s24 = scalar_lea.vmem %s30_s16, 256  ;;  %p1088_p4 = scmp.lt.s32.totalorder %s30_s16, %s30_s16 }
   0xa   :  { %p1084_p3 = scmp.ne.s32.totalorder %s30_s16, %s1083_s24  ;;  %p1089_p5 = scmp.lt.s32.totalorder %s1083_s24, %s1083_s24 }
   0xc   :  { %p1090_p6 = por %p1089_p5, %p1088_p4 }
   0xe   :  { %p1091_p7 = pnand %p1090_p6, %p1084_p3 }
  0x10   :  { %1094 = shalt.err (!%p1091_p7)
}
  0x11   :  { %s1168_s25 = smov 64   ;;  %s1169_s26 = smov 4  }
  0x12   :  { %35 = dma.hbm_to_vmem [thread:$0]  %s1363_s1, 256, %s30_s16, [#allocation7], %s1168_s25, %s1168_s25, %s1169_s26  }
  0x13   :  { %s1170_s29 = smov [#allocation3]   ;;  %s1095_s7 = scalar_lea.hbm %s1362_s0, 512 }
  0x14   :  { %s17_s30 = sshll.u32 %s1170_s29, 4  ;;  %p1096_p8 = scmp.ne.s32.totalorder %s1362_s0, %s1095_s7  ;;  %s18_s30 = int_to_ptr.vmem [resolvable:$true] %s17_s30 }
  0x15   :  { %p1099_p9 = scmp.lt.u32.totalorder %s1095_s7, %s1362_s0 }
  0x17   :  { %p1101_p10 = pnand %p1099_p9, %p1096_p8 }
  0x19   :  { %1104 = shalt.err (!%p1101_p10)
}
  0x1a   :  { %s1105_s12 = scalar_lea.vmem %s18_s30, 512  ;;  %p1110_p12 = scmp.lt.s32.totalorder %s18_s30, %s18_s30 }
  0x1b   :  { %p1106_p11 = scmp.ne.s32.totalorder %s18_s30, %s1105_s12  ;;  %p1111_p13 = scmp.lt.s32.totalorder %s1105_s12, %s1105_s12 }
  0x1d   :  { %p1112_p0 = por %p1111_p13, %p1110_p12 }
  0x1f   :  { %p1113_p1 = pnand %p1112_p0, %p1106_p11 }
  0x21   :  { %1116 = shalt.err (!%p1113_p1)
}
  0x22   :  { %s1171_s1 = smov 128   ;;  %s1172_s13 = smov 8  }
  0x23   :  { %23 = dma.hbm_to_vmem [thread:$0]  %s1362_s0, 512, %s18_s30, [#allocation4], %s1171_s1, %s1171_s1, %s1172_s13  }
  0x24   :  { %s1173_s16 = smov [#allocation8]   ;;  %s1117_s20 = scalar_lea.hbm %s1364_s2, 256 }
  0x25   :  { %s41_s17 = sshll.u32 %s1173_s16, 4  ;;  %p1118_p2 = scmp.ne.s32.totalorder %s1364_s2, %s1117_s20  ;;  %s42_s17 = int_to_ptr.vmem [resolvable:$true] %s41_s17 }
  0x26   :  { %p1121_p3 = scmp.lt.u32.totalorder %s1117_s20, %s1364_s2 }
  0x28   :  { %p1123_p4 = pnand %p1121_p3, %p1118_p2 }
  0x2a   :  { %1126 = shalt.err (!%p1123_p4)
}
  0x2b   :  { %s1127_s27 = scalar_lea.vmem %s42_s17, 256  ;;  %p1132_p6 = scmp.lt.s32.totalorder %s42_s17, %s42_s17 }
  0x2c   :  { %p1128_p5 = scmp.ne.s32.totalorder %s42_s17, %s1127_s27  ;;  %p1133_p7 = scmp.lt.s32.totalorder %s1127_s27, %s1127_s27 }
  0x2e   :  { %p1134_p8 = por %p1133_p7, %p1132_p6 }
  0x30   :  { %p1135_p9 = pnand %p1134_p8, %p1128_p5 }
  0x32   :  { %1138 = shalt.err (!%p1135_p9)
}
  0x33   :  { %47 = dma.hbm_to_vmem [thread:$0]  %s1364_s2, 256, %s42_s17, [#allocation7], %s1168_s25, %s1168_s25, %s1169_s26  }
  0x34   :  { %1161 = dma.done.wait [#allocation4], 512  }
  0x35   :  { %1162 = vsyncadd [#allocation4], 4294966784 }
  0x36   :  { %1163 = dma.done.wait [#allocation7], 512  }
  0x37   :  { %1164 = vsyncadd [#allocation7], 4294966784  ;;  %v1174_v0 = vmov 0.0   ;;  %vm1175_vm0 = vmmov 0   ;;  %v70_v1 = vld [vmem:[#allocation3] sm:$0xff]  ;;  %v71_v2 = vld [vmem:[#allocation3 + $0x8] sm:$0xff] }
  0x38   :  { %919 = vmatprep.subr.bf16.mxu0 %v1174_v0  ;;  %921 = vmatprep.mubr.msk.bf16.mxu0 %vm1175_vm0, %v1174_v0  ;;  %v72_v3 = vpack.c.bf16 %v71_v2, %v70_v1  ;;  %v1036_v4 = vld [vmem:[%s1365_s3] sm:$0xff]   ;;  %vm78_vm1 = vcmask 130048   ;;  %v1038_v6 = vld [vmem:[#allocation6 + $0x8] sm:$0xff]   ;;  %v1039_v7 = vld [vmem:[#allocation8] sm:$0xff]   ;;  %vm135_vm2 = vcmask 261120   ;;  %s1176_s3 = smov 112  }
  0x39   :  { %925 = vmatprep.subr.bf16.mxu1 %v1174_v0  ;;  %929 = vmatprep.mubr.msk.bf16.mxu1 %vm1175_vm0, %v1174_v0  ;;  %v1037_v5 = vld [vmem:[#allocation6] sm:$0xff]   ;;  %v1040_v8 = vld [vmem:[#allocation8 + $0x8] sm:$0xff]   ;;  %vm1269_vm3 = vmpackc.low %vm78_vm1, %vm78_vm1  ;;  %s1177_s26 = smov [#allocation9]  }
  0x3a   :  { %920 = vmatpush3.bf16.msra.mxu0 %v72_v3  ;;  %926 = vmatpush3.bf16.msra.mxu1 %v1039_v7  ;;  %v421_v25 = vld [vmem:[#allocation3 + $0x10] sm:$0xff]  ;;  %v422_v26 = vld [vmem:[#allocation3 + $0x18] sm:$0xff]  ;;  %s847_s29 = sshll.u32 %s1177_s26, 4  ;;  %s848_s29 = int_to_ptr.vmem [resolvable:$true] %s847_s29 }
  0x3b   :  { %933 = vmatprep.subr.bf16.mxu0 %v1174_v0  ;;  %927 = vmatprep.subr.bf16.mxu1 %v1174_v0  ;;  %v423_v27 = vpack.c.bf16 %v422_v26, %v421_v25  ;;  %s1139_s30 = scalar_lea.vmem %s848_s29, 1024  ;;  %p1144_p11 = scmp.lt.s32.totalorder %s848_s29, %s848_s29 }
  0x3c   :  { %p1140_p10 = scmp.ne.s32.totalorder %s848_s29, %s1139_s30  ;;  %p1145_p12 = scmp.lt.s32.totalorder %s1139_s30, %s1139_s30 }
  0x3d   :  { %922 = vmatmul.mubr.msk.bf16.vlgmr.msra.gmra.mrb[0].mxu0 %vm78_vm1, %v1036_v4 }
  0x3e   :  { %934 = vmatpush3.bf16.msra.mxu0 %v1037_v5  ;;  %937 = vmatprep.mubr.msk.bf16.mxu0 %vm1175_vm0, %v1174_v0  ;;  %p1146_p13 = por %p1145_p12, %p1144_p11 }
  0x3f   :  { %935 = vmatprep.subr.bf16.mxu0 %v1174_v0  ;;  %928 = vmatpush3.bf16.msra.mxu1 %v1040_v8 }
  0x40   :  { %p1147_p0 = pnand %p1146_p13, %p1140_p10 }
  0x42   :  { %936 = vmatpush3.bf16.msra.mxu0 %v1038_v6  ;;  %930 = vmatmul.mubr.msk.bf16.vlgmr.msra.gmra.mrb[0].mxu1 %vm135_vm2, %v72_v3 }
 0x110   :  { %v116_v9 = vpop.f32.mrb[0].mxu0 }
 0x111   :  { %v923_v10 = vpop.f32.mrb[1].mxu0 }
 0x112   :  { %v119_v11 = vpop.f32.mrb[2].mxu0 }
 0x113   :  { %v180_v12 = vpack.c.bf16 %v119_v11, %v116_v9  ;;  %v924_v13 = vpop.f32.mrb[3].mxu0 }
 0x115   :  { %938 = vmatmul.mubr.msk.bf16.vlgmr.msra.gmra.mrb[4].mxu0 %vm135_vm2, %v180_v12  ;;  %v173_v14 = vpop.f32.mrb[0].mxu1 }
 0x116   :  { %v931_v15 = vpop.f32.mrb[1].mxu1  ;;  %945 = vmatprep.mubr.msk.f32.mxu1 %vm78_vm1, %v173_v14 }
 0x117   :  { %v176_v16 = vpop.f32.mrb[2].mxu1 }
 0x118   :  { %v932_v17 = vpop.f32.mrb[3].mxu1  ;;  %328 = vrot.lane.b32.xlu1 %v176_v16, %s1176_s3 }
 0x18a   :  { %v329_v33 = vpop.permute.xlu1 %328 }
 0x1e8   :  { %v230_v18 = vpop.f32.mrb[4].mxu0 }
 0x1e9   :  { %v939_v19 = vpop.f32.mrb[5].mxu0 }
 0x1ea   :  { %v233_v20 = vpop.f32.mrb[6].mxu0 }
 0x1eb   :  { %v991_v22 = vpack.c.bf16 %v233_v20, %v230_v18  ;;  %v940_v23 = vpop.f32.mrb[7].mxu0  ;;  %v1026_v24 = vpack.i.bf16 %v233_v20, %v230_v18 }
 0x1ed   :  { %1027 = vrot.lane.b32.xlu0 %v1026_v24, %s1176_s3  ;;  %993 = vmatprep.subr.msk.bf16.mxu1 %vm1269_vm3, %v991_v22 }
 0x1ee   :  { %996 = vmatpush3.bf16.xpose.msk.msra.mxu1 %vm1269_vm3, %v991_v22 }
 0x1ef   :  { %955 = vmatprep.subr.bf16.mxu1 %v1174_v0 }
 0x1f1   :  { %326 = vrot.lane.b32.xlu0 %v173_v14, %s1176_s3 }
 0x1f5   :  { %946 = vmatmul.mubr.msk.f32.vlgmr.msra.gmra.mrb[4].mxu1 %vm78_vm1, %v176_v16 }
 0x1f6   :  { %956 = vmatpush3.bf16.msra.mxu1 %v423_v27  ;;  %957 = vmatprep.mubr.msk.bf16.mxu1 %vm1175_vm0, %v1174_v0 }
 0x1f7   :  { %969 = vmatprep.subr.bf16.mxu1 %v1174_v0 }
 0x1f9   :  { %958 = vmatmul.mubr.msk.bf16.vlgmr.msra.gmra.mrb[8].mxu1 %vm78_vm1, %v1036_v4 }
 0x1fa   :  { %970 = vmatpush3.bf16.msra.mxu1 %v1037_v5  ;;  %973 = vmatprep.mubr.msk.bf16.mxu1 %vm1175_vm0, %v1174_v0 }
 0x1fb   :  { %971 = vmatprep.subr.bf16.mxu1 %v1174_v0 }
 0x1fe   :  { %972 = vmatpush3.bf16.msra.mxu1 %v1038_v6 }
 0x25f   :  { %v1028_v28 = vpop.permute.xlu0 %1027 }
 0x260   :  { %v1030_v29 = vunpack.i.h.bf16 %v1028_v28  ;;  %v1029_v30 = vunpack.i.l.bf16 %v1028_v28 }
 0x262   :  { %v997_v31 = vpack.c.bf16 %v1030_v29, %v1029_v30 }
 0x263   :  { %v327_v32 = vpop.permute.xlu0 %326 }
 0x264   :  { %999 = vmatprep.subr.msk.bf16.mxu0 %vm1269_vm3, %v997_v31  ;;  %952 = vmatprep.mubr.msk.f32.mxu0 %vm78_vm1, %v327_v32 }
 0x265   :  { %1002 = vmatpush3.bf16.xpose.msk.msra.mxu0 %vm1269_vm3, %v997_v31 }
 0x266   :  { %961 = vmatprep.subr.bf16.mxu0 %v1174_v0 }
 0x26c   :  { %953 = vmatmul.mubr.msk.f32.vlgmr.msra.gmra.mrb[8].mxu0 %vm78_vm1, %v329_v33 }
 0x26d   :  { %962 = vmatpush3.bf16.msra.mxu0 %v1039_v7  ;;  %965 = vmatprep.mubr.msk.bf16.mxu0 %vm1175_vm0, %v1174_v0 }
 0x26e   :  { %963 = vmatprep.subr.bf16.mxu0 %v1174_v0 }
 0x271   :  { %964 = vmatpush3.bf16.msra.mxu0 %v1040_v8 }
 0x274   :  { %966 = vmatmul.mubr.msk.bf16.vlgmr.msra.gmra.mrb[12].mxu0 %vm135_vm2, %v423_v27 }
 0x2c8   :  { %v947_v34 = vpop.f32.mrb[4].mxu1 }
 0x2c9   :  { %325 = vst.msk [vmem:[#allocation2 + $0x8] sm:$0xff] %vm78_vm1, %v947_v34  ;;  %v315_v35 = vpop.f32.mrb[5].mxu1 }
 0x2ca   :  { %324 = vst.msk [vmem:[#allocation2] sm:$0xff] %vm78_vm1, %v315_v35 }
 0x2cc   :  { %v458_v36 = vpop.f32.mrb[8].mxu1 }
 0x2cd   :  { %v959_v37 = vpop.f32.mrb[9].mxu1 }
 0x2ce   :  { %v461_v38 = vpop.f32.mrb[10].mxu1 }
 0x2cf   :  { %v509_v39 = vpack.c.bf16 %v461_v38, %v458_v36  ;;  %v960_v40 = vpop.f32.mrb[11].mxu1 }
 0x2d0   :  { %v739_v60 = vld [vmem:[#allocation2 + $0x8] sm:$0xff] }
 0x2d1   :  { %974 = vmatmul.mubr.msk.bf16.vlgmr.msra.gmra.mrb[12].mxu1 %vm135_vm2, %v509_v39  ;;  %v738_v47 = vld [vmem:[#allocation2] sm:$0xff]  ;;  %v749_v61 = vsel %vm78_vm1, %v739_v60, -inf }
 0x2d2   :  { %v746_v48 = vsel %vm78_vm1, %v738_v47, -inf }
 0x33f   :  { %v954_v41 = vpop.f32.mrb[8].mxu0 }
 0x340   :  { %419 = vst.msk [vmem:[#allocation2 + $0x18] sm:$0xff] %vm78_vm1, %v954_v41  ;;  %v408_v42 = vpop.f32.mrb[9].mxu0 }
 0x341   :  { %418 = vst.msk [vmem:[#allocation2 + $0x10] sm:$0xff] %vm78_vm1, %v408_v42 }
 0x347   :  { %v502_v43 = vpop.f32.mrb[12].mxu0  ;;  %v741_v51 = vld [vmem:[#allocation2 + $0x18] sm:$0xff] }
 0x348   :  { %644 = vrot.lane.b32.xlu0 %v502_v43, %s1176_s3  ;;  %v967_v44 = vpop.f32.mrb[13].mxu0  ;;  %981 = vmatprep.mubr.msk.f32.mxu0 %vm78_vm1, %v502_v43  ;;  %v740_v49 = vld [vmem:[#allocation2 + $0x10] sm:$0xff]  ;;  %v755_v52 = vsel %vm78_vm1, %v741_v51, -inf }
 0x349   :  { %v505_v45 = vpop.f32.mrb[14].mxu0  ;;  %v752_v50 = vsel %vm78_vm1, %v740_v49, -inf }
 0x34a   :  { %v968_v46 = vpop.f32.mrb[15].mxu0 }
 0x367   :  { %747 = vmax.xlane.f32.xlu0 %v746_v48 }
 0x36b   :  { %753 = vmax.xlane.f32.xlu0 %v752_v50 }
 0x36f   :  { %756 = vmax.xlane.f32.xlu0 %v755_v52 }
 0x3a4   :  { %v547_v53 = vpop.f32.mrb[12].mxu1 }
 0x3a5   :  { %v975_v54 = vpop.f32.mrb[13].mxu1 }
 0x3a6   :  { %v550_v55 = vpop.f32.mrb[14].mxu1 }
 0x3a7   :  { %v1031_v56 = vpack.i.bf16 %v550_v55, %v547_v53  ;;  %v1003_v57 = vpack.c.bf16 %v550_v55, %v547_v53  ;;  %v976_v58 = vpop.f32.mrb[15].mxu1 }
 0x3a9   :  { %1032 = vrot.lane.b32.xlu1 %v1031_v56, %s1176_s3  ;;  %1005 = vmatprep.subr.msk.bf16.mxu0 %vm1269_vm3, %v1003_v57 }
 0x3aa   :  { %1008 = vmatpush3.bf16.xpose.msk.msra.mxu0 %vm1269_vm3, %v1003_v57 }
 0x3ad   :  { %646 = vrot.lane.b32.xlu1 %v505_v45, %s1176_s3 }
 0x3b1   :  { %982 = vmatmul.mubr.msk.f32.vlgmr.msra.gmra.mrb[10].mxu0 %vm78_vm1, %v505_v45 }
 0x3ba   :  { %v645_v59 = vpop.permute.xlu0 %644 }
 0x3bb   :  { %988 = vmatprep.mubr.msk.f32.mxu1 %vm78_vm1, %v645_v59 }
 0x3d1   :  { %750 = vmax.xlane.f32.xlu1 %v749_v61 }
 0x3f4   :  { %v748_v9 = vpop.xlane.xlu0 %747 }
 0x3f5   :  { %v770_v13 = vsub.f32 %v738_v47, %v748_v9 }
 0x3f7   :  { %v778_v17 = vmul.f32 1.442695, %v770_v13 }
 0x3f8   :  { %v754_v10 = vpop.xlane.xlu0 %753 }
 0x3f9   :  { %v772_v18 = vsub.f32 %v740_v49, %v754_v10 }
 0x3fb   :  { %v782_v21 = vmul.f32 1.442695, %v772_v18 }
 0x3fc   :  { %v757_v14 = vpop.xlane.xlu0 %756 }
 0x3fd   :  { %v773_v15 = vsub.f32 %v741_v51, %v757_v14 }
 0x3ff   :  { %v784_v19 = vmul.f32 1.442695, %v773_v15 }
 0x41b   :  { %v1033_v62 = vpop.permute.xlu1 %1032 }
 0x41c   :  { %v1035_v63 = vunpack.i.h.bf16 %v1033_v62  ;;  %v1034_v0 = vunpack.i.l.bf16 %v1033_v62 }
 0x41e   :  { %v1009_v1 = vpack.c.bf16 %v1035_v63, %v1034_v0 }
 0x41f   :  { %v647_v2 = vpop.permute.xlu1 %646 }
 0x420   :  { %1011 = vmatprep.subr.msk.bf16.mxu1 %vm1269_vm3, %v1009_v1 }
 0x421   :  { %1014 = vmatpush3.bf16.xpose.msk.msra.mxu1 %vm1269_vm3, %v1009_v1 }
 0x428   :  { %989 = vmatmul.mubr.msk.f32.vlgmr.msra.gmra.mrb[6].mxu1 %vm78_vm1, %v647_v2 }
 0x45e   :  { %v751_v11 = vpop.xlane.xlu1 %750 }
 0x45f   :  { %v771_v12 = vsub.f32 %v739_v60, %v751_v11 }
 0x461   :  { %v780_v16 = vmul.f32 1.442695, %v771_v12 }
 0x463   :  { %1041 = vpow2.f32 %v780_v16 }
 0x464   :  { %1043 = vpow2.f32 %v778_v17 }
 0x465   :  { %1045 = vpow2.f32 %v784_v19 }
 0x466   :  { %1047 = vpow2.f32 %v782_v21 }
 0x46d   :  { %v1042_v26 = vpop.eup %1041 }
 0x46e   :  { %v1044_v28 = vpop.eup %1043  ;;  %v797_v29 = vsel %vm78_vm1, %v1042_v26, 0.0 }
 0x46f   :  { %v1046_v30 = vpop.eup %1045  ;;  %v794_v31 = vsel %vm78_vm1, %v1044_v28, 0.0 }
 0x470   :  { %v1048_v32 = vpop.eup %1047  ;;  %v803_v33 = vsel %vm78_vm1, %v1046_v30, 0.0 }
 0x471   :  { %v800_v34 = vsel %vm78_vm1, %v1048_v32, 0.0 }
 0x484   :  { %v983_v3 = vpop.f32.mrb[10].mxu0 }
 0x485   :  { %643 = vst.msk [vmem:[#allocation2 + $0x28] sm:$0xff] %vm78_vm1, %v983_v3  ;;  %v632_v4 = vpop.f32.mrb[11].mxu0 }
 0x486   :  { %642 = vst.msk [vmem:[#allocation2 + $0x20] sm:$0xff] %vm78_vm1, %v632_v4 }
 0x48c   :  { %v743_v5 = vld [vmem:[#allocation2 + $0x28] sm:$0xff] }
 0x48d   :  { %v761_v6 = vsel %vm78_vm1, %v743_v5, -inf  ;;  %v742_v7 = vld [vmem:[#allocation2 + $0x20] sm:$0xff] }
 0x48e   :  { %762 = vmax.xlane.f32.xlu0 %v761_v6  ;;  %v758_v8 = vsel %vm78_vm1, %v742_v7, -inf }
 0x48f   :  { %759 = vmax.xlane.f32.xlu1 %v758_v8 }
 0x4fb   :  { %v990_v20 = vpop.f32.mrb[6].mxu1 }
 0x4fc   :  { %737 = vst.msk [vmem:[#allocation2 + $0x38] sm:$0xff] %vm78_vm1, %v990_v20  ;;  %v726_v22 = vpop.f32.mrb[7].mxu1 }
 0x4fd   :  { %736 = vst.msk [vmem:[#allocation2 + $0x30] sm:$0xff] %vm78_vm1, %v726_v22 }
 0x503   :  { %v745_v23 = vld [vmem:[#allocation2 + $0x38] sm:$0xff] }
 0x504   :  { %v767_v24 = vsel %vm78_vm1, %v745_v23, -inf  ;;  %v744_v25 = vld [vmem:[#allocation2 + $0x30] sm:$0xff] }
 0x505   :  { %768 = vmax.xlane.f32.xlu0 %v767_v24  ;;  %v764_v27 = vsel %vm78_vm1, %v744_v25, -inf }
 0x506   :  { %765 = vmax.xlane.f32.xlu1 %v764_v27 }
 0x509   :  { %798 = vadd.xlane.f32.xlu0 %v797_v29 }
 0x50a   :  { %795 = vadd.xlane.f32.xlu1 %v794_v31 }
 0x50d   :  { %804 = vadd.xlane.f32.xlu0 %v803_v33 }
 0x50e   :  { %801 = vadd.xlane.f32.xlu1 %v800_v34 }
 0x51b   :  { %v763_v35 = vpop.xlane.xlu0 %762 }
 0x51c   :  { %v775_v36 = vsub.f32 %v743_v5, %v763_v35  ;;  %v760_v37 = vpop.xlane.xlu1 %759 }
 0x51d   :  { %v774_v38 = vsub.f32 %v742_v7, %v760_v37 }
 0x51e   :  { %v788_v39 = vmul.f32 1.442695, %v775_v36 }
 0x51f   :  { %v786_v40 = vmul.f32 1.442695, %v774_v38 }
 0x520   :  { %1049 = vpow2.f32 %v788_v39 }
 0x521   :  { %1051 = vpow2.f32 %v786_v40 }
 0x52a   :  { %v1050_v41 = vpop.eup %1049 }
 0x52b   :  { %v1052_v42 = vpop.eup %1051  ;;  %v809_v43 = vsel %vm78_vm1, %v1050_v41, 0.0 }
 0x52c   :  { %810 = vadd.xlane.f32.xlu0 %v809_v43  ;;  %v806_v44 = vsel %vm78_vm1, %v1052_v42, 0.0 }
 0x52d   :  { %807 = vadd.xlane.f32.xlu1 %v806_v44 }
 0x592   :  { %v769_v45 = vpop.xlane.xlu0 %768 }
 0x593   :  { %v777_v46 = vsub.f32 %v745_v23, %v769_v45  ;;  %v766_v47 = vpop.xlane.xlu1 %765 }
 0x594   :  { %v776_v48 = vsub.f32 %v744_v25, %v766_v47 }
 0x595   :  { %v792_v49 = vmul.f32 1.442695, %v777_v46 }
 0x596   :  { %v790_v50 = vmul.f32 1.442695, %v776_v48  ;;  %v799_v51 = vpop.xlane.xlu0 %798 }
 0x597   :  { %1053 = vpow2.f32 %v792_v49  ;;  %v796_v52 = vpop.xlane.xlu1 %795 }
 0x598   :  { %1055 = vpow2.f32 %v790_v50 }
 0x599   :  { %1057 = vrcp.f32 %v799_v51 }
 0x59a   :  { %1059 = vrcp.f32 %v796_v52  ;;  %v805_v53 = vpop.xlane.xlu0 %804 }
 0x59b   :  { %1061 = vrcp.f32 %v805_v53  ;;  %v802_v54 = vpop.xlane.xlu1 %801 }
 0x59c   :  { %1063 = vrcp.f32 %v802_v54 }
 0x5a1   :  { %v1054_v55 = vpop.eup %1053 }
 0x5a2   :  { %v1056_v56 = vpop.eup %1055  ;;  %v815_v57 = vsel %vm78_vm1, %v1054_v55, 0.0 }
 0x5a3   :  { %v1058_v58 = vpop.eup %1057  ;;  %816 = vadd.xlane.f32.xlu0 %v815_v57  ;;  %v812_v59 = vsel %vm78_vm1, %v1056_v56, 0.0 }
 0x5a4   :  { %v1060_v60 = vpop.eup %1059  ;;  %v827_v61 = vmul.f32 %v1058_v58, %v1042_v26  ;;  %813 = vadd.xlane.f32.xlu1 %v812_v59 }
 0x5a5   :  { %v1062_v62 = vpop.eup %1061  ;;  %v826_v63 = vmul.f32 %v1060_v60, %v1044_v28 }
 0x5a6   :  { %v1064_v0 = vpop.eup %1063  ;;  %835 = vst.msk [vmem:[#allocation9 + $0x8] sm:$0xff] %vm78_vm1, %v827_v61  ;;  %v829_v1 = vmul.f32 %v1062_v62, %v1046_v30 }
 0x5a7   :  { %834 = vst.msk [vmem:[#allocation9] sm:$0xff] %vm78_vm1, %v826_v63  ;;  %v828_v2 = vmul.f32 %v1064_v0, %v1048_v32 }
 0x5a8   :  { %837 = vst.msk [vmem:[#allocation9 + $0x18] sm:$0xff] %vm78_vm1, %v829_v1 }
 0x5a9   :  { %836 = vst.msk [vmem:[#allocation9 + $0x10] sm:$0xff] %vm78_vm1, %v828_v2 }
 0x5b9   :  { %v811_v3 = vpop.xlane.xlu0 %810 }
 0x5ba   :  { %1065 = vrcp.f32 %v811_v3  ;;  %v808_v4 = vpop.xlane.xlu1 %807 }
 0x5bb   :  { %1067 = vrcp.f32 %v808_v4 }
 0x5c4   :  { %v1066_v5 = vpop.eup %1065 }
 0x5c5   :  { %v1068_v6 = vpop.eup %1067  ;;  %v831_v7 = vmul.f32 %v1066_v5, %v1050_v41 }
 0x5c6   :  { %v830_v8 = vmul.f32 %v1068_v6, %v1052_v42 }
 0x5c7   :  { %839 = vst.msk [vmem:[#allocation9 + $0x28] sm:$0xff] %vm78_vm1, %v831_v7 }
 0x5c8   :  { %838 = vst.msk [vmem:[#allocation9 + $0x20] sm:$0xff] %vm78_vm1, %v830_v8 }
 0x630   :  { %v817_v9 = vpop.xlane.xlu0 %816 }
 0x631   :  { %1069 = vrcp.f32 %v817_v9  ;;  %v814_v10 = vpop.xlane.xlu1 %813 }
 0x632   :  { %1071 = vrcp.f32 %v814_v10 }
 0x63b   :  { %v1070_v11 = vpop.eup %1069 }
 0x63c   :  { %v1072_v12 = vpop.eup %1071  ;;  %v833_v13 = vmul.f32 %v1070_v11, %v1054_v55 }
 0x63d   :  { %v832_v14 = vmul.f32 %v1072_v12, %v1056_v56 }
 0x63e   :  { %841 = vst.msk [vmem:[#allocation9 + $0x38] sm:$0xff] %vm78_vm1, %v833_v13 }
 0x63f   :  { %840 = vst.msk [vmem:[#allocation9 + $0x30] sm:$0xff] %vm78_vm1, %v832_v14 }
 0x640   :  { %1150 = shalt.err (!%p1147_p0)
}
 0x641   :  { %s1151_s7 = scalar_lea.hbm %s1366_s4, 1024 }
 0x642   :  { %p1152_p1 = scmp.ne.s32.totalorder %s1366_s4, %s1151_s7  ;;  %p1155_p2 = scmp.lt.u32.totalorder %s1151_s7, %s1366_s4 }
 0x644   :  { %p1157_p3 = pnand %p1155_p2, %p1152_p1 }
 0x646   :  { %1160 = shalt.err (!%p1157_p3)
}
 0x647   :  { %853 = dma.vmem_to_hbm [thread:$0]  %s848_s29, 1024, %s1366_s4, [#allocation5], %s1171_s1, %s1171_s1, %s1172_s13  }
 0x648   :  { %1165 = dma.done.wait [#allocation5], 1024  }
 0x649   :  { %1166 = vsyncadd [#allocation5], 4294966272 }
 0x64a   :  { %857 = vsyncpa [#allocation4], 1 }
 0x64b   :  { %858 = vsyncpa [#allocation7], 1 }
 0x64c   :  { %859 = vsyncpa [#allocation5], 1 }

</bundles_post_ra>
